<compile_context>
chip_gen: v5e
topology: v5e:2x2
jax: 0.10.0
libtpu: 0.0.40
codegen_flags: <defaults>
</compile_context>

<pallas_src>
import jax
import jax.numpy as jnp
import numpy as np
from jax import lax
from jax.experimental import pallas as pl
from jax.experimental.pallas import tpu as pltpu


def _round_up(x, m):
    return (x + m - 1) // m * m


def _make_kernel(neg_slope=0.1):
    def kernel(x_ref, w_ref, b_ref, o_ref):
        # x_ref: (K_p, tm)      bf16  packed stride-2 taps (K on sublanes, M on lanes)
        # w_ref: (Cout_p, K_p)  bf16  BN-scale-folded conv weights
        # b_ref: (Cout_p, 1)    f32   folded conv-bias + BN bias
        # o_ref: (Cout_p, tm)   bf16  channel-major output tile
        acc = jnp.dot(w_ref[...], x_ref[...], preferred_element_type=jnp.float32)
        y = acc + b_ref[...]
        y = jnp.where(y > 0, y, neg_slope * y)          # LeakyReLU(0.1)
        o_ref[...] = y.astype(o_ref.dtype)
    return kernel


def conv_down_sampling(x_nchw, conv_w, conv_b, bn_gamma, bn_beta, bn_mean,
                       bn_var, eps=1e-5):
    """Forward pass of ConvDownSampling. x_nchw: (N, Cin, H, W) float32."""
    N, Cin, H, W = map(int, x_nchw.shape)
    Cout = int(conv_w.shape[0])
    H_out = (H - 1) // 2 + 1
    W_out = (W - 1) // 2 + 1
    HW = H_out * W_out

    K0 = 9 * Cin                      # 3x3 taps, channel-major
    K_p = _round_up(K0, 16)           # bf16 sublane tile
    Cout_p = _round_up(Cout, 16)      # Cout lives on sublanes now -> pad to 16 only

    # ---- generation-aware tile budget ---------------------------------------
    try:
        vmem_cap = int(pltpu.get_tpu_info().vmem_capacity_bytes)
    except Exception:
        vmem_cap = 64 * 1024 * 1024
    budget = (28 << 20) if vmem_cap <= (64 << 20) else (48 << 20)
    bytes_per_col = 2 * 2 * (K_p + Cout_p)   # double-buffered bf16 in+out per lane column
    M_p0 = _round_up(HW, 128)
    tm = max(128, min(M_p0, (budget // bytes_per_col) // 128 * 128))
    if N * (-(-M_p0 // tm)) < 2 and M_p0 >= 256:
        tm = _round_up(M_p0 // 2, 128)       # keep both v7x TensorCores busy
    M_p = _round_up(HW, tm)
    num_t = M_p // tm

    # ---- wrapper glue: bf16 cast, conv zero-pad, 9-tap channel-major packing -
    x_bf = x_nchw.astype(jnp.bfloat16)                       # cast before any reshuffle
    x_pad = jnp.pad(x_bf, ((0, 0), (0, 0), (1, 1), (1, 1)))  # padding=1
    groups = []
    for kh in range(3):
        for kw in range(3):
            groups.append(
                x_pad[:, :, kh:kh + 2 * H_out:2, kw:kw + 2 * W_out:2])
    xg = jnp.concatenate(groups, axis=1).reshape(N, K0, HW)  # (N, 9*Cin, H_out*W_out)
    xg = jnp.pad(xg, ((0, 0), (0, K_p - K0), (0, M_p - HW)))

    # ---- weights: fold BN scale/bias, channel-major (Cout, 9*Cin) -----------
    scale = bn_gamma / jnp.sqrt(bn_var + eps)                # (Cout,)
    bias = bn_beta + (conv_b - bn_mean) * scale              # (Cout,)
    w_s = conv_w * scale[:, None, None, None]                # (Cout, Cin, 3, 3)
    w_mat = jnp.transpose(w_s, (0, 2, 3, 1)).reshape(Cout, K0)   # (kh, kw, ci) order
    w_mat = jnp.pad(w_mat, ((0, Cout_p - Cout), (0, K_p - K0))).astype(jnp.bfloat16)
    bias_p = jnp.pad(bias, (0, Cout_p - Cout)).reshape(Cout_p, 1).astype(jnp.float32)

    # ---- VMEM estimate (includes weight/bias double buffers) ----------------
    est = (2 * K_p * tm * 2                          # activation tile x2, bf16
           + 2 * Cout_p * tm * 2                     # output tile x2, bf16
           + 2 * Cout_p * _round_up(K_p, 128) * 2    # weights (lane padded) x2
           + 2 * Cout_p * 128 * 4                    # bias (lane padded) x2
           + (1 << 20))                              # compiler scratch slack
    vmem_limit = None
    if est > (16 << 20):
        # never clamp to the full physical VMEM; leave headroom for the compiler
        vmem_limit = int(min(est + (4 << 20), vmem_cap - (8 << 20)))

    cost = pl.CostEstimate(
        flops=2 * N * M_p * Cout_p * K_p,
        transcendentals=0,
        bytes_accessed=(N * K_p * M_p * 2 + N * Cout_p * M_p * 2
                        + Cout_p * K_p * 2 + Cout_p * 4))

    out = pl.pallas_call(
        _make_kernel(),
        out_shape=jax.ShapeDtypeStruct((N, Cout_p, M_p), jnp.bfloat16),
        grid_spec=pltpu.PrefetchScalarGridSpec(
            num_scalar_prefetch=0,
            grid=(N, num_t),
            in_specs=[
                pl.BlockSpec((None, K_p, tm), lambda n, t: (n, 0, t)),
                pl.BlockSpec((Cout_p, K_p), lambda n, t: (0, 0)),
                pl.BlockSpec((Cout_p, 1), lambda n, t: (0, 0)),
            ],
            out_specs=pl.BlockSpec((None, Cout_p, tm), lambda n, t: (n, 0, t)),
        ),
        compiler_params=pltpu.CompilerParams(
            dimension_semantics=("parallel", "parallel"),
            vmem_limit_bytes=vmem_limit),
        cost_estimate=cost,
    )(xg, w_mat, bias_p)

    # (N, Cout_p, M_p) bf16 -> (N, Cout, H_out, W_out) f32 (module returns f32)
    out = out[:, :Cout, :HW].reshape(N, Cout, H_out, W_out)
    return out.astype(jnp.float32)


def conv_down_sampling_ref(x_nchw, conv_w, conv_b, bn_gamma, bn_beta, bn_mean,
                           bn_var, eps=1e-5):
    """Pure-JAX reference (f32) for correctness checking."""
    y = lax.conv_general_dilated(
        x_nchw, conv_w, window_strides=(2, 2), padding=((1, 1), (1, 1)),
        dimension_numbers=("NCHW", "OIHW", "NCHW"))
    y = y + conv_b[None, :, None, None]
    y = (y - bn_mean[None, :, None, None]) / jnp.sqrt(
        bn_var[None, :, None, None] + eps)
    y = y * bn_gamma[None, :, None, None] + bn_beta[None, :, None, None]
    return jnp.where(y > 0, y, 0.1 * y)


if __name__ == "__main__":
    key = jax.random.PRNGKey(0)
    k_x, k_w, k_b, k_g, k_bt = jax.random.split(key, 5)

    in_channels, out_channels = 4, 64
    N, H, W = 2, 16, 16                       # input: (2, 4, 16, 16), NCHW

    x = jax.random.normal(k_x, (N, in_channels, H, W), dtype=jnp.float32)
    conv_w = jax.random.normal(k_w, (out_channels, in_channels, 3, 3),
                               dtype=jnp.float32) * 0.05
    conv_b = jax.random.normal(k_b, (out_channels,), dtype=jnp.float32) * 0.05
    bn_gamma = jax.random.uniform(k_g, (out_channels,), dtype=jnp.float32,
                                  minval=0.5, maxval=1.5)
    bn_beta = jax.random.normal(k_bt, (out_channels,), dtype=jnp.float32) * 0.1
    bn_mean = jnp.zeros((out_channels,), jnp.float32)    # PyTorch BN init
    bn_var = jnp.ones((out_channels,), jnp.float32)

    out = conv_down_sampling(x, conv_w, conv_b, bn_gamma, bn_beta, bn_mean,
                             bn_var)
    out = jax.block_until_ready(out)
    assert out.shape == (N, out_channels, (H - 1) // 2 + 1, (W - 1) // 2 + 1)

    ref = conv_down_sampling_ref(x, conv_w, conv_b, bn_gamma, bn_beta, bn_mean,
                                 bn_var)
    ref = jax.block_until_ready(ref)
    # bf16 matmul operands / bf16 output store (f32 accumulate) -> loosened tol.
    assert np.allclose(np.asarray(out), np.asarray(ref), rtol=2e-2, atol=2e-2)

    print("KERNEL_OK")
</pallas_src>

<mosaic_0001>
module attributes {stable_mosaic.version = 11 : i64} {
  func.func @kernel(%arg0: i32, %arg1: i32, %arg2: memref<1x48x128xbf16, #tpu.memory_space<vmem>>, %arg3: memref<64x48xbf16, #tpu.memory_space<vmem>>, %arg4: memref<64x1xf32, #tpu.memory_space<vmem>>, %arg5: memref<1x64x128xbf16, #tpu.memory_space<vmem>>) attributes {dimension_semantics = [#tpu.dimension_semantics<parallel>, #tpu.dimension_semantics<parallel>], iteration_bounds = array<i64: 2, 1>, scalar_prefetch = 0 : i64, scratch_operands = 0 : i64, tpu.core_type = #tpu.core_type<tc>, window_params = [{transform_indices = @transform_0, window_bounds = array<i64: 1, 48, 128>}, {pipeline_mode = #tpu.pipeline_mode<synchronous>, transform_indices = @transform_1, window_bounds = array<i64: 64, 48>}, {pipeline_mode = #tpu.pipeline_mode<synchronous>, transform_indices = @transform_2, window_bounds = array<i64: 64, 1>}, {transform_indices = @transform_3, window_bounds = array<i64: 1, 64, 128>}]} {
    %c0 = arith.constant 0 : index
    %c0_0 = arith.constant 0 : index
    %0 = vector.load %arg3[%c0, %c0_0] : memref<64x48xbf16, #tpu.memory_space<vmem>>, vector<64x48xbf16>
    %c0_1 = arith.constant 0 : index
    %c0_2 = arith.constant 0 : index
    %c0_3 = arith.constant 0 : index
    %1 = vector.load %arg2[%c0_1, %c0_2, %c0_3] : memref<1x48x128xbf16, #tpu.memory_space<vmem>>, vector<1x48x128xbf16>
    %2 = vector.shape_cast %1 : vector<1x48x128xbf16> to vector<48x128xbf16>
    %cst = arith.constant dense<0.000000e+00> : vector<64x128xf32>
    %3 = tpu.matmul %0, %2, %cst {dimension_numbers = #tpu.dot_dimension_numbers<[1], [0], [0], [1], [0, 0, 1, 1], [], []>} : vector<64x48xbf16>, vector<48x128xbf16>, vector<64x128xf32> -> vector<64x128xf32>
    %c0_4 = arith.constant 0 : index
    %c0_5 = arith.constant 0 : index
    %4 = vector.load %arg4[%c0_4, %c0_5] : memref<64x1xf32, #tpu.memory_space<vmem>>, vector<64x1xf32>
    %5 = vector.broadcast %4 : vector<64x1xf32> to vector<64x128xf32>
    %6 = arith.addf %3, %5 : vector<64x128xf32>
    %cst_6 = arith.constant 0.000000e+00 : f32
    %7 = vector.broadcast %cst_6 : f32 to vector<64x128xf32>
    %8 = arith.cmpf ogt, %6, %7 : vector<64x128xf32>
    %cst_7 = arith.constant 1.000000e-01 : f32
    %9 = vector.broadcast %cst_7 : f32 to vector<64x128xf32>
    %10 = arith.mulf %9, %6 : vector<64x128xf32>
    %11 = arith.select %8, %6, %10 : vector<64x128xi1>, vector<64x128xf32>
    %12 = arith.truncf %11 : vector<64x128xf32> to vector<64x128xbf16>
    %c0_8 = arith.constant 0 : index
    %c0_9 = arith.constant 0 : index
    %c0_10 = arith.constant 0 : index
    %13 = vector.load %arg5[%c0_8, %c0_9, %c0_10] : memref<1x64x128xbf16, #tpu.memory_space<vmem>>, vector<1x64x128xbf16>
    %14 = vector.shape_cast %13 : vector<1x64x128xbf16> to vector<64x128xbf16>
    %15 = vector.shape_cast %12 : vector<64x128xbf16> to vector<1x64x128xbf16>
    tpu.vector_store %arg5[%c0_8, %c0_9, %c0_10], %15 {strides = array<i32>} : memref<1x64x128xbf16, #tpu.memory_space<vmem>>, vector<1x64x128xbf16>,
    return
  }
  func.func @transform_0(%arg0: i32, %arg1: i32) -> (i32, i32, i32) {
    %c0_i32 = arith.constant 0 : i32
    %c0_i32_0 = arith.constant 0 : i32
    return %arg0, %c0_i32, %arg1 : i32, i32, i32
  }
  func.func @transform_1(%arg0: i32, %arg1: i32) -> (i32, i32) {
    %c0_i32 = arith.constant 0 : i32
    %c0_i32_0 = arith.constant 0 : i32
    %c0_i32_1 = arith.constant 0 : i32
    return %c0_i32, %c0_i32_0 : i32, i32
  }
  func.func @transform_2(%arg0: i32, %arg1: i32) -> (i32, i32) {
    %c0_i32 = arith.constant 0 : i32
    %c0_i32_0 = arith.constant 0 : i32
    %c0_i32_1 = arith.constant 0 : i32
    return %c0_i32, %c0_i32_0 : i32, i32
  }
  func.func @transform_3(%arg0: i32, %arg1: i32) -> (i32, i32, i32) {
    %c0_i32 = arith.constant 0 : i32
    %c0_i32_0 = arith.constant 0 : i32
    return %arg0, %c0_i32, %arg1 : i32, i32, i32
  }
}

</mosaic_0001>

<bundles_post_ra>
// kernel: tpu_custom_call.1
= control target key start
LH: loop header
LB: loop body
LE: loop exit
PB: predicated region body
PF: predicated region fallthrough
CT: control target
= control target key end

     0   :  { %8 = vsyncpa [#allocation3], 0  ;;  %s858_s0 = inlined_call_operand.vmem [shape: bf16[2,48,128], index: 0, kind: input, shape index: {}]   ;;  %s859_s1 = inlined_call_operand.vmem [shape: bf16[64,48], index: 1, kind: input, shape index: {}]   ;;  %s860_s2 = inlined_call_operand.vmem [shape: f32[64,1], index: 2, kind: input, shape index: {}]   ;;  %s861_s3 = inlined_call_operand.hbm [shape: bf16[2,64,128], index: 3, kind: output, shape index: {}]  }
   0x1   :  { %10 = vsyncpa [#allocation3 + $0x1], 0  ;;  %s721_s12 = smov 0   ;;  %s723_s13 = smov 0  }
   0x2   :  { %s725_s14 = smov 0   ;;  %s727_s15 = smov 0  }
   0x3   :  { %s729_s16 = smov 0   ;;  %s731_s17 = smov 0  }
   0x4 LB: > { %s472_s18 = sadd.s32 4294967295, %s696_s17   ;;  %s473_s19 = sadd.s32 4294967294, %s696_s17   ;;  %s696_s17 = sphi %s731_s17, %s16_s17   ;;  %s692_s16 = sphi %s729_s16, %s868_s16   ;;  %s688_s15 = sphi %s727_s15, %s867_s15   ;;  %s684_s14 = sphi %s725_s14, %s866_s14   ;;  %s680_s13 = sphi %s723_s13, %s865_s13   ;;  %s676_s12 = sphi %s721_s12, %s864_s12  }
   0x5   : > { %s28_s20 = sadd.s32 1, %s692_s16  ;;  %s107_s21 = sadd.s32 1, %s684_s14 }
   0x6   : > { %p30_p0 = scmp.ge.s32.totalorder %s28_s20, 2  ;;  %p117_p1 = scmp.ne.s32.totalorder %s684_s14, %s680_s13 }
   0x7   : > { %p118_p2 = scmp.eq.s32.totalorder %s472_s18, 1  ;;  %p123_p3 = scmp.ne.s32.totalorder %s680_s13, %s676_s12 }
   0x8   : > { %s870_s20 = smov (%p30_p0, %s28_s20), 0  ;;  %p124_p5 = scmp.eq.s32.totalorder %s473_s19, 1 }
   0x9   : > { %p761_p4 = por %p118_p2, %p117_p1  ;;  %s102_s23 = ssub.s32 %s692_s16, %s870_s20 }
   0xa   : > { %p476_p6 = scmp.ge.s32.totalorder %s696_s17, 1  ;;  %p105_p7 = scmp.eq.s32.totalorder %s102_s23, 0 }
   0xb   : > { %p768_p8 = por %p124_p5, %p123_p3  ;;  %p159_p9 = scmp.lt.s32.totalorder %s696_s17, 3 }
   0xc   : > { %s774_s25 = scalar_select %p105_p7, %s684_s14, %s107_s21  }
   0xd   : > { %p160_p10 = pnand %p476_p6, %p159_p9 }
   0xe   : > { %p186_p11 = scmp.lt.s32.totalorder (!%p160_p10), %s688_s15, 1  ;;  %s183_s11 = sand.u32 (!%p160_p10), 1, %s680_s13  }
   0xf   : > { %163 = sbr.rel (%p160_p10) target bundleno = 192 (0xc0), region = 32  ;;  %s477_s18 = sshll.u32 (!%p160_p10), %s183_s11, 5 }
  0x10   : > { %s523_s19 = sshll.u32 (!%p160_p10), %s688_s15, 5  ;;  %s378_s29 = scalar_lea.sflag (!%p160_p10), [#allocation3], %s183_s11 }
  0x11   : > { %s390_s26 = scalar_lea.hbm (!%p160_p10), %s861_s3, %s523_s19  ;;  %s638_s7 = scalar_lea.hbm (!%p160_p10), %s861_s3, 64 }
  0x12   : > { %s393_s28 = sshll.u32 (!%p160_p10), %s390_s26, 4  ;;  %s394_s28 = int_to_ptr.hbm [resolvable:$true] %s393_s28 }
  0x14   : > { %v211_v0 = vld [vmem:[%s860_s2 + $0x10] sm:$0xff]  ;;  %v209_v1 = vld [vmem:[%s860_s2] sm:$0xff]  ;;  %v698_v2 = vmov 0   ;;  %s187_s30 = scalar_select %p186_p11, %s688_s15, 1  ;;  %v212_v5 = vld [vmem:[%s860_s2 + $0x18] sm:$0xff]  ;;  %vm295_vm0 = vcmask 392192  }
  0x15   : > { %616 = vset.pattern.permute.xlu1 %v698_v2  ;;  %615 = vset.pattern.permute.xlu0 %v698_v2  ;;  %v213_v3 = vld [vmem:[%s860_s2 + $0x20] sm:$0xff]  ;;  %v210_v6 = vld [vmem:[%s860_s2 + $0x8] sm:$0xff]  ;;  %v216_v12 = vld [vmem:[%s860_s2 + $0x38] sm:$0xff]  ;;  %s185_s15 = scalar_lea.vmem [#allocation2], %s477_s18 }
  0x16   : > { %229 = vperm.xlu1 %616, %v211_v0   ;;  %219 = vperm.xlu0 %615, %v209_v1   ;;  %s556_s6 = smul.u32 24, %s187_s30  ;;  %v214_v8 = vld [vmem:[%s860_s2 + $0x28] sm:$0xff]  ;;  %v516_v10 = vld [vmem:[%s859_s1] sm:$0xff]  ;;  %v215_v13 = vld [vmem:[%s860_s2 + $0x30] sm:$0xff]  ;;  %s391_s27 = sshll.u32 %s185_s15, 4  ;;  %s392_s27 = int_to_ptr.vmem [resolvable:$true] %s391_s27 }
  0x17   : > { %617 = vset.pattern.permute.xlu2 %v698_v2  ;;  %v517_v11 = vld [vmem:[%s859_s1 + $0x8] sm:$0xff]  ;;  %v518_v14 = vld [vmem:[%s859_s1 + $0x10] sm:$0xff]  ;;  %v519_v15 = vld [vmem:[%s859_s1 + $0x18] sm:$0xff]  ;;  %s632_s30 = sshra.s32 %s394_s28, 4  ;;  %s633_s30 = int_to_ptr.hbm [resolvable:$true] %s632_s30 }
  0x18   : > { %239 = vperm.xlu2 %617, %v213_v3   ;;  %s193_s9 = scalar_lea.vmem %s858_s0, %s556_s6  ;;  %s634_s4 = scalar_lea.hbm %s633_s30, 32 }
  0x19   : > { %v522_v4 = vld [vmem:[%s193_s9 + $0x10] sm:$0xff]  ;;  %v521_v7 = vld [vmem:[%s193_s9 + $0x8] sm:$0xff]  ;;  %v520_v9 = vld [vmem:[%s193_s9] sm:$0xff]  ;;  %p635_p12 = scmp.ne.s32.totalorder %s633_s30, %s634_s4  ;;  %p639_p1 = scmp.lt.s32.totalorder %s633_s30, %s861_s3 }
  0x1a   : > { %313 = vmatpush.bf16.msra.mxu0 %v522_v4  ;;  %547 = vmatpush.bf16.msra.mxu1 %v522_v4  ;;  %p640_p2 = scmp.lt.s32.totalorder %s638_s7, %s634_s4 }
  0x1b   : > { %548 = vmatpush.bf16.msra.mxu2 %v522_v4  ;;  %549 = vmatpush.bf16.msra.mxu3 %v522_v4  ;;  %p636_p13 = pnand %p635_p12, %p761_p4 }
  0x1c   : > { %p641_p3 = por %p640_p2, %p639_p1 }
  0x1d   : > { %p637_p0 = pneg %p636_p13 }
  0x1e   : > { %234 = vperm.xlu1 %616, %v212_v5   ;;  %224 = vperm.xlu0 %615, %v210_v6  }
  0x1f   : > { %314 = vmatpush.bf16.msra.mxu0 %v521_v7  ;;  %550 = vmatpush.bf16.msra.mxu1 %v521_v7  ;;  %p642_p5 = pnand %p641_p3, %p637_p0 }
  0x20   : > { %244 = vperm.xlu2 %617, %v214_v8   ;;  %551 = vmatpush.bf16.msra.mxu2 %v521_v7 }
  0x21   : > { %552 = vmatpush.bf16.msra.mxu3 %v521_v7 }
  0x23   : > { %315 = vmatpush.bf16.msra.mxu0 %v520_v9  ;;  %553 = vmatpush.bf16.msra.mxu1 %v520_v9 }
  0x24   : > { %554 = vmatpush.bf16.msra.mxu2 %v520_v9 }
  0x25   : > { %555 = vmatpush.bf16.msra.mxu3 %v520_v9 }
  0x26   : > { %254 = vperm.xlu1 %616, %v216_v12   ;;  %249 = vperm.xlu0 %615, %v215_v13  }
  0x27   : > { %507 = vmatmul.msk.bf16.vlgmr.msra.gmra.mxu0 %vm295_vm0, %v516_v10  ;;  %508 = vmatmul.msk.bf16.vlgmr.msra.gmra.mxu1 %vm295_vm0, %v517_v11 }
  0x28   : > { %509 = vmatmul.msk.bf16.vlgmr.msra.gmra.mxu2 %vm295_vm0, %v518_v14  ;;  %510 = vmatmul.msk.bf16.vlgmr.msra.gmra.mxu3 %vm295_vm0, %v519_v15 }
  0x72   : > { %v240_v22 = vpop.permute.xlu2 %239 }
  0x7a   : > { %v245_v43 = vpop.permute.xlu2 %244 }
  0x88   : > { %v220_v16 = vpop.permute.xlu0 %219  ;;  %v230_v17 = vpop.permute.xlu1 %229 }
  0x90   : > { %v225_v20 = vpop.permute.xlu0 %224  ;;  %v235_v21 = vpop.permute.xlu1 %234 }
  0x98   : > { %v250_v33 = vpop.permute.xlu0 %249  ;;  %v255_v42 = vpop.permute.xlu1 %254 }
  0xa4   : > { %v317_v18 = vpop.f32.mrf.mxu0  ;;  %v322_v19 = vpop.f32.mrf.mxu1 }
  0xa5   : > { %v318_v23 = vadd.f32 %v317_v18, %v220_v16  ;;  %v323_v24 = vadd.f32 %v322_v19, %v230_v17 }
  0xa7   : > { %v345_v29 = vmul.f32 0.1, %v318_v23  ;;  %v347_v30 = vmul.f32 0.1, %v323_v24  ;;  %vm337_vm1 = vcmp.gt.f32.partialorder %v318_v23, 0.0  ;;  %vm339_vm2 = vcmp.gt.f32.partialorder %v323_v24, 0.0 }
  0xa9   : > { %v353_v38 = vsel %vm337_vm1, %v318_v23, %v345_v29  ;;  %v355_v39 = vsel %vm339_vm2, %v323_v24, %v347_v30 }
  0xab   : > { %v327_v25 = vpop.f32.mrf.mxu2  ;;  %v332_v26 = vpop.f32.mrf.mxu3 }
  0xac   : > { %v319_v27 = vpop.f32.mrf.mxu0  ;;  %v324_v28 = vpop.f32.mrf.mxu1  ;;  %v328_v36 = vadd.f32 %v327_v25, %v240_v22  ;;  %v333_v37 = vadd.f32 %v332_v26, %v250_v33 }
  0xad   : > { %v320_v31 = vadd.f32 %v319_v27, %v225_v20  ;;  %v325_v32 = vadd.f32 %v324_v28, %v235_v21 }
  0xae   : > { %v349_v48 = vmul.f32 0.1, %v328_v36  ;;  %v351_v49 = vmul.f32 0.1, %v333_v37  ;;  %vm341_vm5 = vcmp.gt.f32.partialorder %v328_v36, 0.0  ;;  %vm343_vm6 = vcmp.gt.f32.partialorder %v333_v37, 0.0 }
  0xaf   : > { %vm338_vm3 = vcmp.gt.f32.partialorder %v320_v31, 0.0  ;;  %v346_v34 = vmul.f32 0.1, %v320_v31  ;;  %vm340_vm4 = vcmp.gt.f32.partialorder %v325_v32, 0.0  ;;  %v348_v35 = vmul.f32 0.1, %v325_v32 }
  0xb0   : > { %v357_v54 = vsel %vm341_vm5, %v328_v36, %v349_v48  ;;  %v359_v55 = vsel %vm343_vm6, %v333_v37, %v351_v49 }
  0xb1   : > { %v354_v40 = vsel %vm338_vm3, %v320_v31, %v346_v34  ;;  %v356_v41 = vsel %vm340_vm4, %v325_v32, %v348_v35 }
  0xb2   : > { %v527_v44 = vpack.c.bf16 %v354_v40, %v353_v38  ;;  %v532_v45 = vpack.c.bf16 %v356_v41, %v355_v39 }
  0xb3   : > { %v329_v46 = vpop.f32.mrf.mxu2  ;;  %v334_v47 = vpop.f32.mrf.mxu3 }
  0xb4   : > { %528 = vst [vmem:[%s185_s15] sm:$0xff] %v527_v44   ;;  %v330_v50 = vadd.f32 %v329_v46, %v245_v43  ;;  %v335_v51 = vadd.f32 %v334_v47, %v255_v42 }
  0xb5   : > { %544 = vst [vmem:[%s185_s15 + $0x8] sm:$0xff] %v532_v45  }
  0xb6   : > { %vm342_vm7 = vcmp.gt.f32.partialorder %v330_v50, 0.0  ;;  %v350_v52 = vmul.f32 0.1, %v330_v50  ;;  %vm344_vm8 = vcmp.gt.f32.partialorder %v335_v51, 0.0  ;;  %v352_v53 = vmul.f32 0.1, %v335_v51 }
  0xb8   : > { %v358_v56 = vsel %vm342_vm7, %v330_v50, %v350_v52  ;;  %v360_v57 = vsel %vm344_vm8, %v335_v51, %v352_v53 }
  0xb9   : > { %v537_v58 = vpack.c.bf16 %v358_v56, %v357_v54  ;;  %v542_v59 = vpack.c.bf16 %v360_v57, %v359_v55 }
  0xbb   : > { %545 = vst [vmem:[%s185_s15 + $0x10] sm:$0xff] %v537_v58  }
  0xbc   : > { %546 = vst [vmem:[%s185_s15 + $0x18] sm:$0xff] %v542_v59  }
  0xbd   : > { %645 = shalt.err (!%p642_p5)
}
  0xbe   : > { %s699_s10 = smov 64   ;;  %s700_s11 = smov 4  }
  0xbf   : > { %557 = dma.vmem_to_hbm [thread:$0]  (%p761_p4), %s392_s27, 512, %s394_s28, %s378_s29, %s699_s10, %s699_s10, %s700_s11  }
  0xc0 PF: > { %p563_p6 = scmp.ge.s32.totalorder %s696_s17, 2  ;;  %s408_s18 = sand.u32 1, %s676_s12  }
  0xc1   : > { %s409_s19 = scalar_lea.sflag [#allocation3], %s408_s18 }
  0xc2   : > { %p560_p7 = pnand %p563_p6, %p768_p8 }
  0xc4   : > { %p561_p9 = pneg %p560_p7 }
  0xc6   : > { %671 = dma.done.wait (%p561_p9), %s409_s19, 512  }
  0xc7   : > { %673 = vsyncadd (%p561_p9), %s409_s19, 4294966784  ;;  %s16_s17 = sadd.s32 1, %s696_s17   ;;  %s864_s12 = smov %s680_s13 }
  0xc8   : > { %p13_p10 = scmp.ge.s32.totalorder %s16_s17, 4   ;;  %s865_s13 = smov %s684_s14 }
  0xc9   : > { %s866_s14 = smov %s774_s25  ;;  %s867_s15 = smov %s692_s16 }
  0xca   : > { %s868_s16 = smov %s870_s20  ;;  %15 = sbr.rel (!%p13_p10) target bundleno = 4 (0x4), region = 67 }
  0xcf   :  { %415 = vsyncpa [#allocation3], 1 }
  0xd0   :  { %417 = vsyncpa [#allocation3 + $0x1], 1 }

</bundles_post_ra>
